<compile_context>
chip_gen: v6e
topology: v6e:2x2x1
jax: 0.10.0
libtpu: 0.0.40
codegen_flags: <defaults>
</compile_context>

<pallas_src>
import jax
import jax.numpy as jnp
from jax import lax
from jax.experimental import pallas as pl
from jax.experimental.pallas import tpu as pltpu


def mlp_kernel(x_ref, w1_ref, b1_ref, w2r_ref, b2_ref, o_ref):
    # ---- linear1 + ReLU (MXU matmul, f32 accumulate) ----
    h = jnp.dot(x_ref[...], w1_ref[...], preferred_element_type=jnp.float32)
    h = jnp.maximum(h + b1_ref[...], 0.0)                      # (TB, H)

    # ---- linear2: (1, H) x (TB, H)^T -> (1, TB) ----
    # rhs-transposed contraction (same dimension numbers as Q @ K^T); the
    # result is lane-dense along the batch, so the store below is a full-lane
    # unmasked vst and the HBM writeback is 4 B per batch row.
    z = lax.dot_general(
        w2r_ref[...], h,
        dimension_numbers=(((1,), (1,)), ((), ())),
        preferred_element_type=jnp.float32,
    )                                                           # (1, TB)
    z = z + b2_ref[0, 0]                                        # SMEM scalar bias

    # ---- sigmoid (exp/recip land on the otherwise-idle EUP slot) ----
    o_ref[...] = jax.nn.sigmoid(z).astype(o_ref.dtype)


def _round_up(n, m):
    return ((n + m - 1) // m) * m


def _choose_block_b(batch, in_f, hidden, vmem_budget_bytes):
    """Pick a batch tile (multiple of 128) from a VMEM budget."""
    lane_in = _round_up(in_f, 128)      # x tiles are lane-padded in VMEM/vregs
    lane_h = _round_up(hidden, 128)     # h intermediate is lane-padded too
    # Per batch row (f32): 2 pipelined x buffers + the loaded x value +
    # the h intermediate (+ slack) + 2 out buffers at 8 padded sublanes.
    bytes_per_row = 4 * (3 * lane_in + 2 * lane_h) + 64
    # Resident (grid-invariant) buffers: w1 / b1 / w2_row, double-buffered.
    resident = 4 * 2 * (_round_up(in_f, 8) * lane_h + 2 * 8 * lane_h)
    budget = max(vmem_budget_bytes - resident, 1 << 20)
    bb = min(budget // bytes_per_row, 8192)

    b128 = _round_up(batch, 128)
    if b128 >= 256:
        # Keep >= 2 grid steps so v7x can shard the "parallel" batch axis
        # across both TensorCores.
        bb = min(bb, _round_up(-(-b128 // 2), 128))
    else:
        bb = 128
    return max(128, (bb // 128) * 128)


def neural_net2_forward(x, w1, b1, w2, b2, *, block_b=None,
                        vmem_budget_bytes=12 * 1024 * 1024):
    """Forward pass of NeuralNet2. x: (B, in), w1: (in, H), b1: (1, H),
    w2: (H, 1), b2: (1, 1) (or broadcastable). Returns (B, 1)."""
    B, in_f = x.shape
    H = w1.shape[1]

    if block_b is None:
        block_b = _choose_block_b(B, in_f, H, vmem_budget_bytes)
    block_b = max(128, _round_up(block_b, 128))

    # Pad batch to a multiple of the tile; padded rows are sliced off below.
    Bp = _round_up(B, block_b)
    if Bp != B:
        x = jnp.pad(x, ((0, Bp - B), (0, 0)))

    w2_row = jnp.reshape(w2, (1, H))        # (1, H): lhs of the trans_b matmul
    b1 = jnp.reshape(b1, (1, H))
    b2 = jnp.reshape(b2, (1, 1))            # single scalar -> SMEM

    grid = (Bp // block_b,)
    out = pl.pallas_call(
        mlp_kernel,
        out_shape=jax.ShapeDtypeStruct((1, Bp), x.dtype),
        grid=grid,
        in_specs=[
            # x: blocked over the batch grid axis, double-buffered by Pallas.
            pl.BlockSpec((block_b, in_f), lambda i: (i, 0)),
            # Weights / biases: resident across all grid steps.
            pl.BlockSpec((in_f, H), lambda i: (0, 0)),
            pl.BlockSpec((1, H), lambda i: (0, 0)),
            pl.BlockSpec((1, H), lambda i: (0, 0)),
            # b2: single scalar -> SMEM (no padded VMEM tile, no vector DMA).
            pl.BlockSpec(memory_space=pltpu.MemorySpace.SMEM),
        ],
        # Lane-dense output: one (1, block_b) column block per grid step of a
        # (1, Bp) array -> minimal HBM writeback, unmasked full-lane stores.
        out_specs=pl.BlockSpec((1, block_b), lambda i: (0, i)),
        compiler_params=pltpu.CompilerParams(
            dimension_semantics=("parallel",),   # shard batch tiles over v7x's 2 TCs
            vmem_limit_bytes=32 * 1024 * 1024,
        ),
    )(x, w1, b1, w2_row, b2)

    # (1, Bp) -> logical (B, 1).
    return out[0, :B][:, None]


def init_params(key, input_size, hidden_size, dtype=jnp.float32):
    # Deterministic PyTorch-style init: U(-1/sqrt(fan_in), 1/sqrt(fan_in))
    k1, k2, k3, k4 = jax.random.split(key, 4)
    bound1 = 1.0 / jnp.sqrt(jnp.array(input_size, dtype))
    bound2 = 1.0 / jnp.sqrt(jnp.array(hidden_size, dtype))
    w1 = jax.random.uniform(k1, (input_size, hidden_size), dtype, -bound1, bound1)
    b1 = jax.random.uniform(k2, (1, hidden_size), dtype, -bound1, bound1)
    w2 = jax.random.uniform(k3, (hidden_size, 1), dtype, -bound2, bound2)
    b2 = jax.random.uniform(k4, (1, 1), dtype, -bound2, bound2)
    return w1, b1, w2, b2


if __name__ == "__main__":
    batch, input_size, hidden_size = 8, 16, 32
    key = jax.random.PRNGKey(0)
    kx, kp = jax.random.split(key)
    x = jax.random.normal(kx, (batch, input_size), jnp.float32)
    w1, b1, w2, b2 = init_params(kp, input_size, hidden_size)

    out = neural_net2_forward(x, w1, b1, w2, b2)
    out = jax.block_until_ready(out)

    # Reference check in plain JAX.
    h_ref = jnp.maximum(x @ w1 + b1, 0.0)
    out_ref = jax.nn.sigmoid(h_ref @ w2 + b2)
    assert out.shape == (batch, 1)
    assert jnp.allclose(out, out_ref, atol=1e-4, rtol=1e-4), (
        float(jnp.max(jnp.abs(out - out_ref))))

    print("KERNEL_OK")
</pallas_src>

<mosaic_0001>
module attributes {stable_mosaic.version = 11 : i64} {
  func.func @mlp_kernel(%arg0: i32, %arg1: memref<128x16xf32, #tpu.memory_space<vmem>>, %arg2: memref<16x32xf32, #tpu.memory_space<vmem>>, %arg3: memref<1x32xf32, #tpu.memory_space<vmem>>, %arg4: memref<1x32xf32, #tpu.memory_space<vmem>>, %arg5: memref<1x1xf32, #tpu.memory_space<smem>>, %arg6: memref<1x128xf32, #tpu.memory_space<vmem>>) attributes {dimension_semantics = [#tpu.dimension_semantics<parallel>], iteration_bounds = array<i64: 1>, scalar_prefetch = 0 : i64, scratch_operands = 0 : i64, tpu.core_type = #tpu.core_type<tc>, window_params = [{transform_indices = @transform_0, window_bounds = array<i64: 128, 16>}, {pipeline_mode = #tpu.pipeline_mode<synchronous>, transform_indices = @transform_1, window_bounds = array<i64: 16, 32>}, {pipeline_mode = #tpu.pipeline_mode<synchronous>, transform_indices = @transform_2, window_bounds = array<i64: 1, 32>}, {pipeline_mode = #tpu.pipeline_mode<synchronous>, transform_indices = @transform_3, window_bounds = array<i64: 1, 32>}, {transform_indices = @transform_4, window_bounds = array<i64: 1, 1>}, {transform_indices = @transform_5, window_bounds = array<i64: 1, 128>}]} {
    %c0 = arith.constant 0 : index
    %c0_0 = arith.constant 0 : index
    %0 = vector.load %arg1[%c0, %c0_0] : memref<128x16xf32, #tpu.memory_space<vmem>>, vector<128x16xf32>
    %c0_1 = arith.constant 0 : index
    %c0_2 = arith.constant 0 : index
    %1 = vector.load %arg2[%c0_1, %c0_2] : memref<16x32xf32, #tpu.memory_space<vmem>>, vector<16x32xf32>
    %cst = arith.constant dense<0.000000e+00> : vector<128x32xf32>
    %2 = tpu.matmul %0, %1, %cst {dimension_numbers = #tpu.dot_dimension_numbers<[1], [0], [0], [1], [0, 0, 1, 1], [], []>} : vector<128x16xf32>, vector<16x32xf32>, vector<128x32xf32> -> vector<128x32xf32>
    %c0_3 = arith.constant 0 : index
    %c0_4 = arith.constant 0 : index
    %3 = vector.load %arg3[%c0_3, %c0_4] : memref<1x32xf32, #tpu.memory_space<vmem>>, vector<1x32xf32>
    %4 = vector.broadcast %3 : vector<1x32xf32> to vector<128x32xf32>
    %5 = arith.addf %2, %4 : vector<128x32xf32>
    %cst_5 = arith.constant 0.000000e+00 : f32
    %6 = vector.broadcast %cst_5 : f32 to vector<128x32xf32>
    %7 = arith.maximumf %5, %6 : vector<128x32xf32>
    %c0_6 = arith.constant 0 : index
    %c0_7 = arith.constant 0 : index
    %8 = vector.load %arg4[%c0_6, %c0_7] : memref<1x32xf32, #tpu.memory_space<vmem>>, vector<1x32xf32>
    %cst_8 = arith.constant dense<0.000000e+00> : vector<1x128xf32>
    %9 = tpu.matmul %8, %7, %cst_8 {dimension_numbers = #tpu.dot_dimension_numbers<[1], [1], [0], [0], [0, 0, 1, 0], [], []>} : vector<1x32xf32>, vector<128x32xf32>, vector<1x128xf32> -> vector<1x128xf32>
    %c0_9 = arith.constant 0 : index
    %c0_10 = arith.constant 0 : index
    %10 = memref.load %arg5[%c0_9, %c0_10] : memref<1x1xf32, #tpu.memory_space<smem>>
    %11 = vector.broadcast %10 : f32 to vector<1x128xf32>
    %12 = arith.addf %9, %11 : vector<1x128xf32>
    %13 = arith.negf %12 : vector<1x128xf32>
    %14 = math.exp %13 : vector<1x128xf32>
    %cst_11 = arith.constant 1.000000e+00 : f32
    %15 = vector.broadcast %cst_11 : f32 to vector<1x128xf32>
    %16 = arith.addf %15, %14 : vector<1x128xf32>
    %17 = arith.divf %15, %16 : vector<1x128xf32>
    %c0_12 = arith.constant 0 : index
    %c0_13 = arith.constant 0 : index
    %18 = vector.load %arg6[%c0_12, %c0_13] : memref<1x128xf32, #tpu.memory_space<vmem>>, vector<1x128xf32>
    tpu.vector_store %arg6[%c0_12, %c0_13], %17 {strides = array<i32>} : memref<1x128xf32, #tpu.memory_space<vmem>>, vector<1x128xf32>,
    return
  }
  func.func @transform_0(%arg0: i32) -> (i32, i32) {
    %c0_i32 = arith.constant 0 : i32
    %c0_i32_0 = arith.constant 0 : i32
    return %arg0, %c0_i32 : i32, i32
  }
  func.func @transform_1(%arg0: i32) -> (i32, i32) {
    %c0_i32 = arith.constant 0 : i32
    %c0_i32_0 = arith.constant 0 : i32
    %c0_i32_1 = arith.constant 0 : i32
    return %c0_i32, %c0_i32_0 : i32, i32
  }
  func.func @transform_2(%arg0: i32) -> (i32, i32) {
    %c0_i32 = arith.constant 0 : i32
    %c0_i32_0 = arith.constant 0 : i32
    %c0_i32_1 = arith.constant 0 : i32
    return %c0_i32, %c0_i32_0 : i32, i32
  }
  func.func @transform_3(%arg0: i32) -> (i32, i32) {
    %c0_i32 = arith.constant 0 : i32
    %c0_i32_0 = arith.constant 0 : i32
    %c0_i32_1 = arith.constant 0 : i32
    return %c0_i32, %c0_i32_0 : i32, i32
  }
  func.func @transform_4(%arg0: i32) -> (i32, i32) {
    %c0_i32 = arith.constant 0 : i32
    %c0_i32_0 = arith.constant 0 : i32
    %c0_i32_1 = arith.constant 0 : i32
    return %c0_i32, %c0_i32_0 : i32, i32
  }
  func.func @transform_5(%arg0: i32) -> (i32, i32) {
    %c0_i32 = arith.constant 0 : i32
    %c0_i32_0 = arith.constant 0 : i32
    return %c0_i32, %arg0 : i32, i32
  }
}

</mosaic_0001>

<bundles_post_ra>
// kernel: tpu_custom_call.1
= control target key start
LH: loop header
LB: loop body
LE: loop exit
PB: predicated region body
PF: predicated region fallthrough
CT: control target
= control target key end

     0   :  { %vm47_vm0 = vcmask 130048   ;;  %s723_s0 = inlined_call_operand.vmem [shape: f32[128,16], index: 0, kind: input, shape index: {}]   ;;  %s724_s1 = inlined_call_operand.vmem [shape: f32[16,32], index: 1, kind: input, shape index: {}]   ;;  %s725_s2 = inlined_call_operand.vmem [shape: f32[1,32], index: 2, kind: input, shape index: {}]   ;;  %s726_s3 = inlined_call_operand.vmem [shape: f32[1,32], index: 3, kind: input, shape index: {}]   ;;  %s727_s4 = inlined_call_operand.<no memory space> [shape: f32[1,1], index: 4, kind: input, shape index: {}]   ;;  %s728_s5 = inlined_call_operand.hbm [shape: f32[1,128], index: 5, kind: output, shape index: {}]  }
   0x1   :  { %v39_v0 = vld [vmem:[%s724_s1 + $0x8] sm:$0xff]  ;;  %v38_v1 = vld [vmem:[%s724_s1] sm:$0xff]  ;;  %v24_v4 = vld [vmem:[%s723_s0 + $0x10] sm:$0xff] }
   0x2   :  { %v22_v2 = vld [vmem:[%s723_s0] sm:$0xff]  ;;  %473 = vmatprep.subr.mxu0 %v39_v0  ;;  %v23_v3 = vld [vmem:[%s723_s0 + $0x8] sm:$0xff]  ;;  %v25_v5 = vld [vmem:[%s723_s0 + $0x18] sm:$0xff] }
   0x3   :  { %477 = vmatprep.mubr.msk.f32.mxu0 %vm47_vm0, %v22_v2  ;;  %474 = vmatpush3.msra.mxu0 %v39_v0 }
   0x4   :  { %475 = vmatprep.subr.mxu0 %v38_v1 }
   0x5   :  { %476 = vmatpush3.msra.mxu0 %v38_v1 }
   0x6   :  { %478 = vmatmul.mubr.msk.f32.vlgmr.msra.gmra.mxu0 %vm47_vm0, %v23_v3 }
   0x7   :  { %480 = vmatprep.mubr.msk.f32.mxu0 %vm47_vm0, %v24_v4 }
   0x8   :  { %11 = vsyncpa [#allocation4], 0  ;;  %v26_v6 = vld [vmem:[%s723_s0 + $0x20] sm:$0xff]  ;;  %v27_v7 = vld [vmem:[%s723_s0 + $0x28] sm:$0xff]  ;;  %v565_v18 = vmov 0.0   ;;  %vm566_vm1 = vmmov 0  }
   0x9   :  { %v28_v8 = vld [vmem:[%s723_s0 + $0x30] sm:$0xff]  ;;  %v29_v9 = vld [vmem:[%s723_s0 + $0x38] sm:$0xff]  ;;  %v30_v10 = vld [vmem:[%s723_s0 + $0x40] sm:$0xff]  ;;  %501 = vmatprep.subr.mxu1 %v565_v18  ;;  %533 = vmatprep.mubr.msk.f32.mxu1 %vm566_vm1, %v565_v18  ;;  %vm260_vm2 = vcmask 261120   ;;  %s567_s6 = smov [#allocation3]  }
   0xa   :  { %481 = vmatmul.mubr.msk.f32.gmra.mxu0 %vm47_vm0, %v25_v5  ;;  %v31_v11 = vld [vmem:[%s723_s0 + $0x48] sm:$0xff]  ;;  %v32_v12 = vld [vmem:[%s723_s0 + $0x50] sm:$0xff]  ;;  %v33_v13 = vld [vmem:[%s723_s0 + $0x58] sm:$0xff]  ;;  %v259_v5 = vstv %s727_s4  ;;  %s395_s7 = sshll.u32 %s567_s6, 4  ;;  %s396_s7 = int_to_ptr.vmem [resolvable:$true] %s395_s7 }
   0xb   :  { %483 = vmatprep.mubr.msk.f32.mxu0 %vm47_vm0, %v26_v6  ;;  %v34_v14 = vld [vmem:[%s723_s0 + $0x60] sm:$0xff]  ;;  %v35_v15 = vld [vmem:[%s723_s0 + $0x68] sm:$0xff]  ;;  %v36_v16 = vld [vmem:[%s723_s0 + $0x70] sm:$0xff]  ;;  %s547_s8 = scalar_lea.vmem %s396_s7, 32  ;;  %p548_p1 = scmp.lt.s32.totalorder %s396_s7, %s396_s7 }
   0xc   :  { %v37_v17 = vld [vmem:[%s723_s0 + $0x78] sm:$0xff]  ;;  %v403_v33 = vld [vmem:[%s725_s2] ss:$0 sm:$0xff] }
   0xd   :  { %v257_v4 = vld [vmem:[%s726_s3] sm:$0x1]  ;;  %s543_s3 = scalar_lea.vmem %s396_s7, 16 }
   0xe   :  { %484 = vmatmul.mubr.msk.f32.gmra.mxu0 %vm47_vm0, %v27_v7  ;;  %p544_p0 = scmp.ne.s32.totalorder %s396_s7, %s543_s3  ;;  %p549_p2 = scmp.lt.s32.totalorder %s547_s8, %s543_s3 }
   0xf   :  { %486 = vmatprep.mubr.msk.f32.mxu0 %vm47_vm0, %v28_v8 }
  0x10   :  { %p550_p3 = por %p549_p2, %p548_p1 }
  0x12   :  { %487 = vmatmul.mubr.msk.f32.gmra.mxu0 %vm47_vm0, %v29_v9  ;;  %p551_p4 = pnand %p550_p3, %p544_p0 }
  0x13   :  { %489 = vmatprep.mubr.msk.f32.mxu0 %vm47_vm0, %v30_v10 }
  0x16   :  { %490 = vmatmul.mubr.msk.f32.gmra.mxu0 %vm47_vm0, %v31_v11 }
  0x17   :  { %492 = vmatprep.mubr.msk.f32.mxu0 %vm47_vm0, %v32_v12 }
  0x1a   :  { %493 = vmatmul.mubr.msk.f32.gmra.mxu0 %vm47_vm0, %v33_v13 }
  0x1b   :  { %495 = vmatprep.mubr.msk.f32.mxu0 %vm47_vm0, %v34_v14 }
  0x1e   :  { %496 = vmatmul.mubr.msk.f32.gmra.mxu0 %vm47_vm0, %v35_v15 }
  0x1f   :  { %498 = vmatprep.mubr.msk.f32.mxu0 %vm47_vm0, %v36_v16 }
  0x22   :  { %499 = vmatmul.mubr.msk.f32.gmra.mxu0 %vm47_vm0, %v37_v17 }
  0xc6   :  { %v670_v19 = vpop.f32.mrf.mxu0 }
  0xc7   :  { %v168_v63 = vadd.f32 %v670_v19, %v403_v33 }
  0xc8   :  { %v672_v20 = vpop.f32.mrf.mxu0 }
  0xc9   :  { %v242_v1 = vmax.f32 %v168_v63, 0.0  ;;  %v163_v2 = vadd.f32 %v403_v33, %v672_v20 }
  0xca   :  { %v482_v21 = vpop.f32.mrf.mxu0 }
  0xcb   :  { %v178_v59 = vadd.f32 %v482_v21, %v403_v33  ;;  %v241_v3 = vmax.f32 %v163_v2, 0.0 }
  0xcc   :  { %v674_v22 = vpop.f32.mrf.mxu0 }
  0xcd   :  { %v244_v61 = vmax.f32 %v178_v59, 0.0  ;;  %v173_v62 = vadd.f32 %v403_v33, %v674_v22 }
  0xce   :  { %v485_v23 = vpop.f32.mrf.mxu0 }
  0xcf   :  { %v188_v55 = vadd.f32 %v485_v23, %v403_v33  ;;  %v243_v0 = vmax.f32 %v173_v62, 0.0 }
  0xd0   :  { %v182_v24 = vpop.f32.mrf.mxu0 }
  0xd1   :  { %v246_v57 = vmax.f32 %v188_v55, 0.0  ;;  %v183_v58 = vadd.f32 %v403_v33, %v182_v24 }
  0xd2   :  { %v488_v25 = vpop.f32.mrf.mxu0 }
  0xd3   :  { %v198_v51 = vadd.f32 %v488_v25, %v403_v33  ;;  %v245_v60 = vmax.f32 %v183_v58, 0.0 }
  0xd4   :  { %v192_v26 = vpop.f32.mrf.mxu0 }
  0xd5   :  { %v248_v53 = vmax.f32 %v198_v51, 0.0  ;;  %v193_v54 = vadd.f32 %v403_v33, %v192_v26 }
  0xd6   :  { %v491_v27 = vpop.f32.mrf.mxu0 }
  0xd7   :  { %v208_v47 = vadd.f32 %v491_v27, %v403_v33  ;;  %v247_v56 = vmax.f32 %v193_v54, 0.0 }
  0xd8   :  { %v202_v28 = vpop.f32.mrf.mxu0 }
  0xd9   :  { %v250_v49 = vmax.f32 %v208_v47, 0.0  ;;  %v203_v50 = vadd.f32 %v403_v33, %v202_v28 }
  0xda   :  { %v494_v29 = vpop.f32.mrf.mxu0 }
  0xdb   :  { %v218_v43 = vadd.f32 %v494_v29, %v403_v33  ;;  %v249_v52 = vmax.f32 %v203_v50, 0.0 }
  0xdc   :  { %v212_v30 = vpop.f32.mrf.mxu0 }
  0xdd   :  { %v252_v45 = vmax.f32 %v218_v43, 0.0  ;;  %v213_v46 = vadd.f32 %v403_v33, %v212_v30 }
  0xde   :  { %v497_v31 = vpop.f32.mrf.mxu0 }
  0xdf   :  { %v228_v39 = vadd.f32 %v497_v31, %v403_v33  ;;  %v251_v48 = vmax.f32 %v213_v46, 0.0 }
  0xe0   :  { %v222_v32 = vpop.f32.mrf.mxu0 }
  0xe1   :  { %v254_v41 = vmax.f32 %v228_v39, 0.0  ;;  %v223_v42 = vadd.f32 %v403_v33, %v222_v32 }
  0xe2   :  { %v500_v34 = vpop.f32.mrf.mxu0 }
  0xe3   :  { %v238_v35 = vadd.f32 %v500_v34, %v403_v33  ;;  %v253_v44 = vmax.f32 %v223_v42, 0.0 }
  0xe4   :  { %v232_v36 = vpop.f32.mrf.mxu0 }
  0xe5   :  { %v256_v37 = vmax.f32 %v238_v35, 0.0  ;;  %v233_v38 = vadd.f32 %v403_v33, %v232_v36 }
  0xe7   :  { %502 = vmatpush3.xpose.msk.msra.mxu1 %vm260_vm2, %v256_v37  ;;  %v255_v40 = vmax.f32 %v233_v38, 0.0 }
  0xe8   :  { %503 = vmatprep.subr.mxu1 %v565_v18 }
  0xeb   :  { %504 = vmatpush3.xpose.msk.msra.mxu1 %vm260_vm2, %v255_v40 }
  0xec   :  { %505 = vmatprep.subr.mxu1 %v565_v18 }
  0xef   :  { %506 = vmatpush3.xpose.msk.msra.mxu1 %vm260_vm2, %v254_v41 }
  0xf0   :  { %507 = vmatprep.subr.mxu1 %v565_v18 }
  0xf3   :  { %508 = vmatpush3.xpose.msk.msra.mxu1 %vm260_vm2, %v253_v44 }
  0xf4   :  { %509 = vmatprep.subr.mxu1 %v565_v18 }
  0xf7   :  { %510 = vmatpush3.xpose.msk.msra.mxu1 %vm260_vm2, %v252_v45 }
  0xf8   :  { %511 = vmatprep.subr.mxu1 %v565_v18 }
  0xfb   :  { %512 = vmatpush3.xpose.msk.msra.mxu1 %vm260_vm2, %v251_v48 }
  0xfc   :  { %513 = vmatprep.subr.mxu1 %v565_v18 }
  0xff   :  { %514 = vmatpush3.xpose.msk.msra.mxu1 %vm260_vm2, %v250_v49 }
 0x100   :  { %515 = vmatprep.subr.mxu1 %v565_v18 }
 0x103   :  { %516 = vmatpush3.xpose.msk.msra.mxu1 %vm260_vm2, %v249_v52 }
 0x104   :  { %517 = vmatprep.subr.mxu1 %v565_v18 }
 0x107   :  { %518 = vmatpush3.xpose.msk.msra.mxu1 %vm260_vm2, %v248_v53 }
 0x108   :  { %519 = vmatprep.subr.mxu1 %v565_v18 }
 0x10b   :  { %520 = vmatpush3.xpose.msk.msra.mxu1 %vm260_vm2, %v247_v56 }
 0x10c   :  { %521 = vmatprep.subr.mxu1 %v565_v18 }
 0x10f   :  { %522 = vmatpush3.xpose.msk.msra.mxu1 %vm260_vm2, %v246_v57 }
 0x110   :  { %523 = vmatprep.subr.mxu1 %v565_v18 }
 0x113   :  { %524 = vmatpush3.xpose.msk.msra.mxu1 %vm260_vm2, %v245_v60 }
 0x114   :  { %525 = vmatprep.subr.mxu1 %v565_v18 }
 0x117   :  { %526 = vmatpush3.xpose.msk.msra.mxu1 %vm260_vm2, %v244_v61 }
 0x118   :  { %527 = vmatprep.subr.mxu1 %v565_v18 }
 0x11b   :  { %528 = vmatpush3.xpose.msk.msra.mxu1 %vm260_vm2, %v243_v0 }
 0x11c   :  { %529 = vmatprep.subr.mxu1 %v565_v18 }
 0x11f   :  { %530 = vmatpush3.xpose.msk.msra.mxu1 %vm260_vm2, %v242_v1 }
 0x120   :  { %531 = vmatprep.subr.mxu1 %v565_v18 }
 0x123   :  { %532 = vmatpush3.xpose.msk.msra.mxu1 %vm260_vm2, %v241_v3 }
 0x126   :  { %534 = vmatmul.mubr.msk.f32.vlgmr.msra.gmra.mxu1 %vm260_vm2, %v257_v4 }
 0x1e6   :  { %v378_v6 = vpop.f32.mrf.mxu1 }
 0x1e7   :  { %v379_v7 = vadd.f32 %v378_v6, %v259_v5 }
 0x1e8   :  { %v535_v8 = vpop.f32.mrf.mxu1 }
 0x1e9   :  { %v437_v9 = vmul.f32 -1.442695, %v379_v7 }
 0x1eb   :  { %539 = vpow2.f32 %v437_v9 }
 0x1f8   :  { %v540_v10 = vpop.eup %539 }
 0x1f9   :  { %v385_v11 = vadd.f32 1.0, %v540_v10 }
 0x1fb   :  { %541 = vrcp.f32 %v385_v11 }
 0x208   :  { %v542_v12 = vpop.eup %541 }
 0x209   :  { %388 = vst [vmem:[#allocation3] sm:$0x1] %v542_v12 }
 0x20a   :  { %554 = shalt.err (!%p551_p4)
}
 0x20b   :  { %398 = dma.vmem_to_hbm [thread:$0]  %s396_s7, 16, %s728_s5, [#allocation4]  }
 0x20c   :  { %563 = dma.done.wait [#allocation4], 16  }
 0x20d   :  { %564 = vsyncadd [#allocation4], 4294967280 }
 0x20e   :  { %402 = vsyncpa [#allocation4], 1 }

</bundles_post_ra>
